<compile_context>
chip_gen: v6e
topology: v6e:2x2x1
jax: 0.10.0
libtpu: 0.0.40
codegen_flags: <defaults>
</compile_context>

<pallas_src>
import jax
import jax.numpy as jnp
from jax.experimental import pallas as pl
from jax.experimental.pallas import tpu as pltpu


# ----------------------------------------------------------------------------
# Kernels
# ----------------------------------------------------------------------------
def _biasfree_ln_kernel(x_ref, w_ref, o_ref):
    """Plain path (one token per row; used when C is already lane-dense)."""
    x = x_ref[...].astype(jnp.float32)
    inv_c = 1.0 / x.shape[-1]
    m = jnp.sum(x, axis=-1, keepdims=True) * inv_c
    d = x - m
    var = jnp.sum(d * d, axis=-1, keepdims=True) * inv_c   # unbiased=False
    inv = jax.lax.rsqrt(var + 1e-5)
    o_ref[...] = (x * inv * w_ref[...]).astype(o_ref.dtype)


def _biasfree_ln_packed_kernel(x_ref, w_ref, sel_ref, selt_ref, o_ref):
    """Packed path: each row holds k consecutive tokens (lane-dense k*C).

    x_ref   : (TM, k*C) tile
    w_ref   : (1, k*C)  f32 weight tiled k times (resident)
    sel_ref : (k*C, k)  0/1 selector, sel[j*C + c, j] = 1 (resident)
    selt_ref: (k, k*C)  its transpose (resident)
    Per-token reductions / broadcasts run as tiny matmuls on the idle MXU.
    """
    x = x_ref[...].astype(jnp.float32)
    k = sel_ref.shape[1]
    inv_c = 1.0 / (sel_ref.shape[0] // k)                                   # = 1/C
    s = jnp.dot(x, sel_ref[...], preferred_element_type=jnp.float32)        # (TM, k)
    m = s * inv_c                                                           # per-token mean
    m_b = jnp.dot(m, selt_ref[...], preferred_element_type=jnp.float32)     # (TM, k*C)
    d = x - m_b
    ss = jnp.dot(d * d, sel_ref[...], preferred_element_type=jnp.float32)   # (TM, k)
    inv = jax.lax.rsqrt(ss * inv_c + 1e-5)                                  # (TM, k)
    inv_b = jnp.dot(inv, selt_ref[...], preferred_element_type=jnp.float32) # (TM, k*C)
    o_ref[...] = (x * inv_b * w_ref[...]).astype(o_ref.dtype)


# ----------------------------------------------------------------------------
# Tiling / packing heuristics (pure Python on static shapes)
# ----------------------------------------------------------------------------
def _vmem_limit_bytes():
    """Per-generation scoped-VMEM limit: ~70% of physical, capped at 96 MiB."""
    try:
        info = pltpu.get_tpu_info()
        cap = getattr(info, "vmem_capacity_bytes", None)
        if cap:
            return int(min(cap * 7 // 10, 96 << 20))
    except Exception:
        pass
    return 48 << 20   # safe on every generation (v7x physical VMEM is 64 MiB)


def _lane_density(width):
    return width / (((width + 127) // 128) * 128)


def _choose_packing(n_tokens, C):
    """Smallest k (dividing n_tokens, keeping >=8 rows) that makes k*C lane-dense."""
    if C % 128 == 0 or n_tokens <= 1:
        return 1
    best_k, best = 1, _lane_density(C)
    max_k = min(n_tokens, max(1, 8192 // C))
    min_rows = min(n_tokens, 8)          # keep sublanes / row tiling useful
    for k in range(2, max_k + 1):
        if n_tokens % k or (n_tokens // k) < min_rows:
            continue
        d = _lane_density(k * C)
        if d > best + 1e-9:
            best_k, best = k, d
        if best >= 1.0 - 1e-9:
            break
    return best_k


def _choose_row_tile(n_rows, row_width, dtype_bytes, vmem_budget):
    """Row tile: ~4-6 MiB (counted at 4 B/elem; f32 temporaries dominate VMEM),
    rounded to the packed-sublane multiple, with >=4 (ideally 8) grid steps when
    possible and a preference for tiles that divide n_rows exactly."""
    mult = 8 * max(1, 4 // max(dtype_bytes, 1))       # 8 f32 / 16 bf16 / 32 int8
    if n_rows <= mult:
        return n_rows                                  # single full block
    per_row_f32 = max(row_width * 4, 1)
    tile_budget = min(6 << 20, max(2 << 20, vmem_budget // 10))
    tm = max(mult, (tile_budget // per_row_f32) // mult * mult)
    if n_rows >= 8 * mult:
        want_steps = 8
    elif n_rows >= 4 * mult:
        want_steps = 4
    else:
        want_steps = 1
    if want_steps > 1:
        rows_per_step = -(-n_rows // want_steps)
        cap = -(-rows_per_step // mult) * mult
        tm = min(tm, max(mult, cap))
    if tm >= n_rows:
        return n_rows
    # Prefer a tm dividing n_rows (no masked ragged last block), but never shrink
    # the tile by more than ~2x to find one.
    lo = max(mult, (tm // 2 // mult) * mult)
    for cand in range(tm, lo - 1, -mult):
        if n_rows % cand == 0:
            return cand
    return tm


# ----------------------------------------------------------------------------
# Wrapper
# ----------------------------------------------------------------------------
@jax.jit
def biasfree_layernorm(x, weight):
    """x: (..., C) array; weight: (C,). Returns the same shape/dtype as x."""
    orig_shape = x.shape
    C = orig_shape[-1]
    n_tokens = 1
    for d in orig_shape[:-1]:
        n_tokens *= d

    k = _choose_packing(n_tokens, C)
    n_rows, W = n_tokens // k, k * C

    x2 = x.reshape(n_rows, W)                       # contiguous => free view
    w2 = jnp.tile(weight.astype(jnp.float32), (k,)).reshape(1, W)

    vmem_limit = _vmem_limit_bytes()
    tm = _choose_row_tile(n_rows, W, x.dtype.itemsize, vmem_limit)
    grid = (pl.cdiv(n_rows, tm),)                   # ragged last block masked by Pallas

    cparams = pltpu.CompilerParams(
        dimension_semantics=("parallel",),
        vmem_limit_bytes=vmem_limit,
    )

    if k == 1:
        out = pl.pallas_call(
            _biasfree_ln_kernel,
            out_shape=jax.ShapeDtypeStruct((n_rows, W), x.dtype),
            grid_spec=pltpu.PrefetchScalarGridSpec(
                num_scalar_prefetch=0,
                grid=grid,
                in_specs=[
                    pl.BlockSpec((tm, W), lambda i: (i, 0)),
                    pl.BlockSpec((1, W), lambda i: (0, 0)),    # resident weight
                ],
                out_specs=pl.BlockSpec((tm, W), lambda i: (i, 0)),
            ),
            compiler_params=cparams,
        )(x2, w2)
    else:
        sel = jnp.repeat(jnp.eye(k, dtype=jnp.float32), C, axis=0)   # (k*C, k)
        sel_t = sel.T                                                # (k, k*C)
        out = pl.pallas_call(
            _biasfree_ln_packed_kernel,
            out_shape=jax.ShapeDtypeStruct((n_rows, W), x.dtype),
            grid_spec=pltpu.PrefetchScalarGridSpec(
                num_scalar_prefetch=0,
                grid=grid,
                in_specs=[
                    pl.BlockSpec((tm, W), lambda i: (i, 0)),
                    pl.BlockSpec((1, W), lambda i: (0, 0)),    # resident weight
                    pl.BlockSpec((W, k), lambda i: (0, 0)),    # resident selector
                    pl.BlockSpec((k, W), lambda i: (0, 0)),    # resident selector^T
                ],
                out_specs=pl.BlockSpec((tm, W), lambda i: (i, 0)),
            ),
            compiler_params=cparams,
        )(x2, w2, sel, sel_t)

    return out.reshape(orig_shape)


# ----------------------------------------------------------------------------
# Self-test
# ----------------------------------------------------------------------------
def _reference(x, weight):
    mean = jnp.mean(x, axis=-1, keepdims=True)
    var = jnp.mean((x - mean) ** 2, axis=-1, keepdims=True)   # unbiased=False
    return x / jnp.sqrt(var + 1e-5) * weight


if __name__ == "__main__":
    # Case 1: module-consistent small shapes; C=32 exercises lane-dense packing (k=4).
    x1 = jax.random.normal(jax.random.PRNGKey(0), (2, 64, 32), dtype=jnp.float32)
    w1 = jnp.ones((32,), dtype=jnp.float32)                    # nn.Parameter(torch.ones)
    o1 = jax.block_until_ready(biasfree_layernorm(x1, w1))
    assert o1.shape == x1.shape and o1.dtype == x1.dtype
    assert jnp.allclose(o1, _reference(x1, w1), atol=2e-5, rtol=2e-5)

    # Case 2: ragged token count + C=48 (packing k=3, partially lane-dense).
    x2 = jax.random.normal(jax.random.PRNGKey(1), (3, 23, 48), dtype=jnp.float32)
    w2 = jax.random.normal(jax.random.PRNGKey(2), (48,), dtype=jnp.float32) * 0.5 + 1.0
    o2 = jax.block_until_ready(biasfree_layernorm(x2, w2))
    assert jnp.allclose(o2, _reference(x2, w2), atol=2e-5, rtol=2e-5)

    # Case 3: C multiple of 128 (no packing) with a masked ragged last row-block.
    x3 = jax.random.normal(jax.random.PRNGKey(3), (4, 129, 128), dtype=jnp.float32)
    w3 = jax.random.normal(jax.random.PRNGKey(4), (128,), dtype=jnp.float32) * 0.1 + 1.0
    o3 = jax.block_until_ready(biasfree_layernorm(x3, w3))
    assert jnp.allclose(o3, _reference(x3, w3), atol=2e-5, rtol=2e-5)

    print("KERNEL_OK")
</pallas_src>

<mosaic_0001>
module attributes {stable_mosaic.version = 11 : i64} {
  func.func @_biasfree_ln_packed_kernel(%arg0: i32, %arg1: memref<8x128xf32, #tpu.memory_space<vmem>>, %arg2: memref<1x128xf32, #tpu.memory_space<vmem>>, %arg3: memref<128x4xf32, #tpu.memory_space<vmem>>, %arg4: memref<4x128xf32, #tpu.memory_space<vmem>>, %arg5: memref<8x128xf32, #tpu.memory_space<vmem>>) attributes {dimension_semantics = [#tpu.dimension_semantics<parallel>], iteration_bounds = array<i64: 4>, scalar_prefetch = 0 : i64, scratch_operands = 0 : i64, tpu.core_type = #tpu.core_type<tc>, window_params = [{transform_indices = @transform_0, window_bounds = array<i64: 8, 128>}, {pipeline_mode = #tpu.pipeline_mode<synchronous>, transform_indices = @transform_1, window_bounds = array<i64: 1, 128>}, {pipeline_mode = #tpu.pipeline_mode<synchronous>, transform_indices = @transform_2, window_bounds = array<i64: 128, 4>}, {pipeline_mode = #tpu.pipeline_mode<synchronous>, transform_indices = @transform_3, window_bounds = array<i64: 4, 128>}, {transform_indices = @transform_4, window_bounds = array<i64: 8, 128>}]} {
    %c0 = arith.constant 0 : index
    %c0_0 = arith.constant 0 : index
    %0 = vector.load %arg1[%c0, %c0_0] : memref<8x128xf32, #tpu.memory_space<vmem>>, vector<8x128xf32>
    %c0_1 = arith.constant 0 : index
    %c0_2 = arith.constant 0 : index
    %1 = vector.load %arg3[%c0_1, %c0_2] : memref<128x4xf32, #tpu.memory_space<vmem>>, vector<128x4xf32>
    %cst = arith.constant dense<0.000000e+00> : vector<8x4xf32>
    %2 = tpu.matmul %0, %1, %cst {dimension_numbers = #tpu.dot_dimension_numbers<[1], [0], [0], [1], [0, 0, 1, 1], [], []>} : vector<8x128xf32>, vector<128x4xf32>, vector<8x4xf32> -> vector<8x4xf32>
    %cst_3 = arith.constant 3.125000e-02 : f32
    %3 = vector.broadcast %cst_3 : f32 to vector<8x4xf32>
    %4 = arith.mulf %2, %3 : vector<8x4xf32>
    %c0_4 = arith.constant 0 : index
    %c0_5 = arith.constant 0 : index
    %5 = vector.load %arg4[%c0_4, %c0_5] : memref<4x128xf32, #tpu.memory_space<vmem>>, vector<4x128xf32>
    %cst_6 = arith.constant dense<0.000000e+00> : vector<8x128xf32>
    %6 = tpu.matmul %4, %5, %cst_6 {dimension_numbers = #tpu.dot_dimension_numbers<[1], [0], [0], [1], [0, 0, 1, 1], [], []>} : vector<8x4xf32>, vector<4x128xf32>, vector<8x128xf32> -> vector<8x128xf32>
    %7 = arith.subf %0, %6 : vector<8x128xf32>
    %8 = arith.mulf %7, %7 : vector<8x128xf32>
    %c0_7 = arith.constant 0 : index
    %c0_8 = arith.constant 0 : index
    %9 = vector.load %arg3[%c0_7, %c0_8] : memref<128x4xf32, #tpu.memory_space<vmem>>, vector<128x4xf32>
    %cst_9 = arith.constant dense<0.000000e+00> : vector<8x4xf32>
    %10 = tpu.matmul %8, %9, %cst_9 {dimension_numbers = #tpu.dot_dimension_numbers<[1], [0], [0], [1], [0, 0, 1, 1], [], []>} : vector<8x128xf32>, vector<128x4xf32>, vector<8x4xf32> -> vector<8x4xf32>
    %cst_10 = arith.constant 3.125000e-02 : f32
    %11 = vector.broadcast %cst_10 : f32 to vector<8x4xf32>
    %12 = arith.mulf %10, %11 : vector<8x4xf32>
    %cst_11 = arith.constant 9.99999974E-6 : f32
    %13 = vector.broadcast %cst_11 : f32 to vector<8x4xf32>
    %14 = arith.addf %12, %13 : vector<8x4xf32>
    %15 = math.rsqrt %14 : vector<8x4xf32>
    %c0_12 = arith.constant 0 : index
    %c0_13 = arith.constant 0 : index
    %16 = vector.load %arg4[%c0_12, %c0_13] : memref<4x128xf32, #tpu.memory_space<vmem>>, vector<4x128xf32>
    %cst_14 = arith.constant dense<0.000000e+00> : vector<8x128xf32>
    %17 = tpu.matmul %15, %16, %cst_14 {dimension_numbers = #tpu.dot_dimension_numbers<[1], [0], [0], [1], [0, 0, 1, 1], [], []>} : vector<8x4xf32>, vector<4x128xf32>, vector<8x128xf32> -> vector<8x128xf32>
    %18 = arith.mulf %0, %17 : vector<8x128xf32>
    %c0_15 = arith.constant 0 : index
    %c0_16 = arith.constant 0 : index
    %19 = vector.load %arg2[%c0_15, %c0_16] : memref<1x128xf32, #tpu.memory_space<vmem>>, vector<1x128xf32>
    %20 = vector.broadcast %19 : vector<1x128xf32> to vector<8x128xf32>
    %21 = arith.mulf %18, %20 : vector<8x128xf32>
    %c0_17 = arith.constant 0 : index
    %c0_18 = arith.constant 0 : index
    %22 = vector.load %arg5[%c0_17, %c0_18] : memref<8x128xf32, #tpu.memory_space<vmem>>, vector<8x128xf32>
    tpu.vector_store %arg5[%c0_17, %c0_18], %21 {strides = array<i32>} : memref<8x128xf32, #tpu.memory_space<vmem>>, vector<8x128xf32>,
    return
  }
  func.func @transform_0(%arg0: i32) -> (i32, i32) {
    %c0_i32 = arith.constant 0 : i32
    %c0_i32_0 = arith.constant 0 : i32
    return %arg0, %c0_i32 : i32, i32
  }
  func.func @transform_1(%arg0: i32) -> (i32, i32) {
    %c0_i32 = arith.constant 0 : i32
    %c0_i32_0 = arith.constant 0 : i32
    %c0_i32_1 = arith.constant 0 : i32
    return %c0_i32, %c0_i32_0 : i32, i32
  }
  func.func @transform_2(%arg0: i32) -> (i32, i32) {
    %c0_i32 = arith.constant 0 : i32
    %c0_i32_0 = arith.constant 0 : i32
    %c0_i32_1 = arith.constant 0 : i32
    return %c0_i32, %c0_i32_0 : i32, i32
  }
  func.func @transform_3(%arg0: i32) -> (i32, i32) {
    %c0_i32 = arith.constant 0 : i32
    %c0_i32_0 = arith.constant 0 : i32
    %c0_i32_1 = arith.constant 0 : i32
    return %c0_i32, %c0_i32_0 : i32, i32
  }
  func.func @transform_4(%arg0: i32) -> (i32, i32) {
    %c0_i32 = arith.constant 0 : i32
    %c0_i32_0 = arith.constant 0 : i32
    return %arg0, %c0_i32 : i32, i32
  }
}

</mosaic_0001>

<bundles_post_ra>
// kernel: tile.9
= control target key start
LH: loop header
LB: loop body
LE: loop exit
PB: predicated region body
PF: predicated region fallthrough
CT: control target
= control target key end

     0   :  { %vm8_vm0 = vcmask 261120   ;;  %s40_s8 = smov 32   ;;  %s41_s9 = smov 64   ;;  %vm14_vm1 = vcmask 1048320   ;;  %vm20_vm2 = vcmask 785920   ;;  %vm26_vm3 = vcmask 523520   ;;  %s58_s0 = inlined_call_operand.vmem [shape: f32[4,32], index: 0, kind: input, shape index: {}]   ;;  %s59_s1 = inlined_call_operand.vmem [shape: f32[1,128], index: 1, kind: output, shape index: {}]  }
   0x1   :  { %v5_v0 = vld [vmem:[%s58_s0] sm:$0xf]  ;;  %s39_s0 = smov 96  }
   0x2   :  { %6 = vst [vmem:[#allocation1] sm:$0xf] %v5_v0 }
   0x9   :  { %v11_v1 = vld [vmem:[#allocation1 + $0x3] sm:$0x1]   ;;  %v23_v2 = vld [vmem:[#allocation1 + $0x1] sm:$0x1]   ;;  %v7_v3 = vld [vmem:[#allocation1] sm:$0x1]  }
   0xa   :  { %12 = vrot.lane.b32.xlu0 %v11_v1, %s39_s0  ;;  %24 = vrot.lane.b32.xlu1 %v23_v2, %s40_s8  ;;  %v17_v4 = vld [vmem:[#allocation1 + $0x2] sm:$0x1]   ;;  %9 = vst.msk [vmem:[#allocation0] sm:$0x1] %vm8_vm0, %v7_v3  }
   0xe   :  { %18 = vrot.lane.b32.xlu0 %v17_v4, %s41_s9 }
  0x7c   :  { %v13_v5 = vpop.permute.xlu0 %12   ;;  %v25_v6 = vpop.permute.xlu1 %24  }
  0x7d   :  { %15 = vst.msk [vmem:[#allocation0] sm:$0x1] %vm14_vm1, %v13_v5  }
  0x80   :  { %v19_v7 = vpop.permute.xlu0 %18  }
  0x81   :  { %21 = vst.msk [vmem:[#allocation0] sm:$0x1] %vm20_vm2, %v19_v7  }
  0x82   :  { %27 = vst.msk [vmem:[#allocation0] sm:$0x1] %vm26_vm3, %v25_v6  }
  0x89   :  { %v32_v8 = vld [vmem:[#allocation0] sm:$0x1] }
  0x8a   :  { %35 = vst [vmem:[%s59_s1] sm:$0x1] %v32_v8 }

// kernel: tile.8
= control target key start
LH: loop header
LB: loop body
LE: loop exit
PB: predicated region body
PF: predicated region fallthrough
CT: control target
= control target key end

     0   :  { %s22_s0 = inlined_call_operand.vmem [shape: f32[32], index: 0, kind: input, shape index: {}]   ;;  %s23_s1 = inlined_call_operand.vmem [shape: f32[4,32], index: 1, kind: output, shape index: {}]  }
   0x1   :  { %v4_v0 = vld [vmem:[%s22_s0] ss:$0 sm:$0xff] }
   0x2   :  { %5 = vst [vmem:[%s23_s1] sm:$0xf] %v4_v0 }

// kernel: biasfree_layernorm.1
= control target key start
LH: loop header
LB: loop body
LE: loop exit
PB: predicated region body
PF: predicated region fallthrough
CT: control target
= control target key end

     0   :  { %s750_s15 = smov 0   ;;  %s896_s0 = inlined_call_operand.vmem [shape: f32[32,128], index: 0, kind: input, shape index: {}]   ;;  %s897_s1 = inlined_call_operand.vmem [shape: f32[1,128], index: 1, kind: input, shape index: {}]   ;;  %s898_s2 = inlined_call_operand.vmem [shape: f32[128,4], index: 2, kind: input, shape index: {}]   ;;  %s899_s3 = inlined_call_operand.vmem [shape: f32[4,128], index: 3, kind: input, shape index: {}]   ;;  %s900_s4 = inlined_call_operand.vmem [shape: f32[32,128], index: 4, kind: output, shape index: {}]  }
   0x1 LB: > { %s571_s16 = sadd.s32 4294967295, %s721_s15   ;;  %p575_p0 = scmp.ge.s32.totalorder %s721_s15, 1  ;;  %s721_s15 = sphi %s750_s15, %s14_s15  }
   0x2   : > { %p161_p1 = scmp.lt.s32.totalorder %s721_s15, 5 }
   0x4   : > { %p162_p2 = pnand %p575_p0, %p161_p1 }
   0x5   : > { %p185_p3 = scmp.lt.s32.totalorder (!%p162_p2), %s571_s16, 3 }
   0x6   : > { %165 = sbr.rel (%p162_p2) target bundleno = 845 (0x34d), region = 36 }
   0xb   : > { %v761_v0 = vld [vmem:[%s898_s2 + $0x78] sm:$0xff]  ;;  %v723_v1 = vmov 0.0   ;;  %v767_v2 = vld [vmem:[%s898_s2 + $0x70] sm:$0xff]  ;;  %vm724_vm0 = vmmov 0   ;;  %v777_v3 = vld [vmem:[%s898_s2 + $0x68] sm:$0xff]  ;;  %s902_s16 = smov (!%p185_p3, %s571_s16), 3 }
   0xc   : > { %623 = vmatprep.subr.mxu0 %v723_v1  ;;  %655 = vmatprep.mubr.msk.f32.mxu0 %vm724_vm0, %v723_v1  ;;  %v786_v4 = vld [vmem:[%s898_s2 + $0x60] sm:$0xff]  ;;  %v793_v5 = vld [vmem:[%s898_s2 + $0x58] sm:$0xff]  ;;  %v204_v6 = vld [vmem:[%s898_s2 + $0x50] sm:$0xff]  ;;  %s576_s19 = sshll.u32 %s902_s16, 3  ;;  %vm286_vm1 = vcmask 1043456   ;;  %vm282_vm2 = vcmask 31744  }
   0xd   : > { %624 = vmatpush3.msra.mxu0 %v761_v0  ;;  %658 = vmatprep.subr.mxu1 %v723_v1  ;;  %v203_v7 = vld [vmem:[%s898_s2 + $0x48] sm:$0xff]  ;;  %v202_v8 = vld [vmem:[%s898_s2 + $0x40] sm:$0xff]  ;;  %v201_v9 = vld [vmem:[%s898_s2 + $0x38] sm:$0xff]  ;;  %s188_s26 = scalar_lea.vmem %s896_s0, %s576_s19  ;;  %s192_s9 = scalar_lea.vmem %s900_s4, %s576_s19 }
   0xe   : > { %625 = vmatprep.subr.mxu0 %v723_v1  ;;  %660 = vmatprep.mubr.msk.f32.mxu1 %vm724_vm0, %v723_v1  ;;  %v200_v10 = vld [vmem:[%s898_s2 + $0x30] sm:$0xff]  ;;  %v199_v11 = vld [vmem:[%s898_s2 + $0x28] sm:$0xff]  ;;  %v198_v12 = vld [vmem:[%s898_s2 + $0x20] sm:$0xff] }
   0xf   : > { %626 = vmatpush3.msra.mxu0 %v767_v2  ;;  %v197_v13 = vld [vmem:[%s898_s2 + $0x18] sm:$0xff]  ;;  %v196_v14 = vld [vmem:[%s898_s2 + $0x10] sm:$0xff]  ;;  %v195_v15 = vld [vmem:[%s898_s2 + $0x8] sm:$0xff] }
  0x10   : > { %627 = vmatprep.subr.mxu0 %v723_v1  ;;  %v194_v16 = vld [vmem:[%s898_s2] sm:$0xff] }
  0x11   : > { %628 = vmatpush3.msra.mxu0 %v777_v3  ;;  %v193_v17 = vld [vmem:[%s188_s26] sm:$0xff] }
  0x12   : > { %629 = vmatprep.subr.mxu0 %v723_v1  ;;  %v281_v18 = vld [vmem:[%s899_s3] sm:$0xf] }
  0x13   : > { %630 = vmatpush3.msra.mxu0 %v786_v4  ;;  %659 = vmatpush3.msk.msra.mxu1 %vm286_vm1, %v281_v18  ;;  %v582_v32 = vld [vmem:[%s897_s1] ss:$0 sm:$0xff] }
  0x14   : > { %631 = vmatprep.subr.mxu0 %v723_v1  ;;  %663 = vmatprep.subr.mxu1 %v723_v1 }
  0x15   : > { %632 = vmatpush3.msra.mxu0 %v793_v5 }
  0x16   : > { %633 = vmatprep.subr.mxu0 %v723_v1 }
  0x17   : > { %634 = vmatpush3.msra.mxu0 %v204_v6 }
  0x18   : > { %635 = vmatprep.subr.mxu0 %v723_v1 }
  0x19   : > { %636 = vmatpush3.msra.mxu0 %v203_v7 }
  0x1a   : > { %637 = vmatprep.subr.mxu0 %v723_v1 }
  0x1b   : > { %638 = vmatpush3.msra.mxu0 %v202_v8 }
  0x1c   : > { %639 = vmatprep.subr.mxu0 %v723_v1 }
  0x1d   : > { %640 = vmatpush3.msra.mxu0 %v201_v9 }
  0x1e   : > { %641 = vmatprep.subr.mxu0 %v723_v1 }
  0x1f   : > { %642 = vmatpush3.msra.mxu0 %v200_v10 }
  0x20   : > { %643 = vmatprep.subr.mxu0 %v723_v1 }
  0x21   : > { %644 = vmatpush3.msra.mxu0 %v199_v11 }
  0x22   : > { %645 = vmatprep.subr.mxu0 %v723_v1 }
  0x23   : > { %646 = vmatpush3.msra.mxu0 %v198_v12 }
  0x24   : > { %647 = vmatprep.subr.mxu0 %v723_v1 }
  0x25   : > { %648 = vmatpush3.msra.mxu0 %v197_v13 }
  0x26   : > { %649 = vmatprep.subr.mxu0 %v723_v1 }
  0x27   : > { %650 = vmatpush3.msra.mxu0 %v196_v14 }
  0x28   : > { %651 = vmatprep.subr.mxu0 %v723_v1 }
  0x29   : > { %652 = vmatpush3.msra.mxu0 %v195_v15 }
  0x2a   : > { %653 = vmatprep.subr.mxu0 %v723_v1 }
  0x2b   : > { %654 = vmatpush3.msra.mxu0 %v194_v16 }
  0x2c   : > { %656 = vmatmul.mubr.f32.vlgmr.msra.gmra.mxu0 %v193_v17  ;;  %698 = vmatprep.subr.mxu0 %v723_v1 }
  0x2d   : > { %700 = vmatprep.mubr.msk.f32.mxu0 %vm724_vm0, %v723_v1  ;;  %699 = vmatpush3.msk.msra.mxu0 %vm286_vm1, %v281_v18 }
  0xec   : > { %v276_v19 = vpop.f32.mrf.mxu0 }
  0xed   : > { %v280_v20 = vmul.f32 0.03125, %v276_v19 }
  0xee   : > { %v657_v21 = vpop.f32.mrf.mxu0 }
  0xef   : > { %661 = vmatmul.mubr.msk.f32.vlgmr.msra.gmra.mxu1 %vm282_vm2, %v280_v20 }
  0xf0   : > { %664 = vmatpush3.msra.mxu1 %v761_v0  ;;  %695 = vmatprep.mubr.msk.f32.mxu1 %vm724_vm0, %v723_v1 }
  0xf1   : > { %665 = vmatprep.subr.mxu1 %v723_v1 }
  0xf2   : > { %666 = vmatpush3.msra.mxu1 %v767_v2 }
  0xf3   : > { %667 = vmatprep.subr.mxu1 %v723_v1 }
  0xf4   : > { %668 = vmatpush3.msra.mxu1 %v777_v3 }
  0xf5   : > { %669 = vmatprep.subr.mxu1 %v723_v1 }
  0xf6   : > { %670 = vmatpush3.msra.mxu1 %v786_v4 }
  0xf7   : > { %671 = vmatprep.subr.mxu1 %v723_v1 }
  0xf8   : > { %672 = vmatpush3.msra.mxu1 %v793_v5 }
  0xf9   : > { %673 = vmatprep.subr.mxu1 %v723_v1 }
  0xfa   : > { %674 = vmatpush3.msra.mxu1 %v204_v6 }
  0xfb   : > { %675 = vmatprep.subr.mxu1 %v723_v1 }
  0xfc   : > { %676 = vmatpush3.msra.mxu1 %v203_v7 }
  0xfd   : > { %677 = vmatprep.subr.mxu1 %v723_v1 }
  0xfe   : > { %678 = vmatpush3.msra.mxu1 %v202_v8 }
  0xff   : > { %679 = vmatprep.subr.mxu1 %v723_v1 }
 0x100   : > { %680 = vmatpush3.msra.mxu1 %v201_v9 }
 0x101   : > { %681 = vmatprep.subr.mxu1 %v723_v1 }
 0x102   : > { %682 = vmatpush3.msra.mxu1 %v200_v10 }
 0x103   : > { %683 = vmatprep.subr.mxu1 %v723_v1 }
 0x104   : > { %684 = vmatpush3.msra.mxu1 %v199_v11 }
 0x105   : > { %685 = vmatprep.subr.mxu1 %v723_v1 }
 0x106   : > { %686 = vmatpush3.msra.mxu1 %v198_v12 }
 0x107   : > { %687 = vmatprep.subr.mxu1 %v723_v1 }
 0x108   : > { %688 = vmatpush3.msra.mxu1 %v197_v13 }
 0x109   : > { %689 = vmatprep.subr.mxu1 %v723_v1 }
 0x10a   : > { %690 = vmatpush3.msra.mxu1 %v196_v14 }
 0x10b   : > { %691 = vmatprep.subr.mxu1 %v723_v1 }
 0x10c   : > { %692 = vmatpush3.msra.mxu1 %v195_v15 }
 0x10d   : > { %693 = vmatprep.subr.mxu1 %v723_v1 }
 0x10e   : > { %694 = vmatpush3.msra.mxu1 %v194_v16 }
 0x1af   : > { %v356_v22 = vpop.f32.mrf.mxu1 }
 0x1b0   : > { %v360_v23 = vsub.f32 %v193_v17, %v356_v22 }
 0x1b1   : > { %v662_v24 = vpop.f32.mrf.mxu1 }
 0x1b2   : > { %v361_v25 = vmul.f32 %v360_v23, %v360_v23 }
 0x1b4   : > { %696 = vmatmul.mubr.f32.vlgmr.msra.gmra.mxu1 %v361_v25 }
 0x274   : > { %v428_v26 = vpop.f32.mrf.mxu1 }
 0x275   : > { %v432_v27 = vmul.f32 0.03125, %v428_v26 }
 0x276   : > { %v697_v28 = vpop.f32.mrf.mxu1 }
 0x277   : > { %v433_v29 = vadd.f32 1e-05, %v432_v27 }
 0x279   : > { %713 = vrsqrt.f32 %v433_v29 }
 0x286   : > { %v714_v30 = vpop.eup %713 }
 0x287   : > { %701 = vmatmul.mubr.msk.f32.vlgmr.msra.gmra.mxu0 %vm282_vm2, %v714_v30 }
 0x347   : > { %v504_v31 = vpop.f32.mrf.mxu0 }
 0x348   : > { %v508_v33 = vmul.f32 %v504_v31, %v193_v17 }
 0x349   : > { %v702_v34 = vpop.f32.mrf.mxu0 }
 0x34a   : > { %v516_v35 = vmul.f32 %v582_v32, %v508_v33 }
 0x34c   : > { %517 = vst [vmem:[%s192_s9] sm:$0xff] %v516_v35 }
 0x34d PF: > { %s14_s15 = sadd.s32 1, %s721_s15  }
 0x34e   : > { %p11_p4 = scmp.ge.s32.totalorder %s14_s15, 6  }
 0x350   :  { %13 = sbr.rel (!%p11_p4) target bundleno = 1 (0x1), region = 66 }

</bundles_post_ra>
